<compile_context>
chip_gen: v5e
topology: v5e:2x2
jax: 0.10.0
libtpu: 0.0.40
codegen_flags: <defaults>
</compile_context>

<pallas_src>
import jax
import jax.numpy as jnp
from jax.experimental import pallas as pl
from jax.experimental.pallas import tpu as pltpu


def _round_up(x: int, m: int) -> int:
    return ((x + m - 1) // m) * m


def highway_kernel(x_ref, w_ref, b_ref, o_ref):
    # x_ref: (C, tile_l) input tile  (channels on sublanes, positions on lanes)
    # w_ref: (2C, C)     fused [W_proj; W_trans] (f32 or bf16)
    # b_ref: (2C, 1)     fused [b_proj; b_trans], f32
    # o_ref: (C, tile_l) output tile (lane-dense: tile_l is a multiple of 128)
    x = x_ref[...]                            # (C, tile_l)
    c = x.shape[0]

    # Single fused MXU pass: (2C, C) @ (C, tile_l) -> (2C, tile_l), f32 accumulation.
    x_mm = x if x.dtype == w_ref.dtype else x.astype(w_ref.dtype)
    y = jnp.dot(w_ref[...], x_mm, preferred_element_type=jnp.float32)
    y = y + b_ref[...].astype(jnp.float32)    # broadcast bias across lanes

    proj = jnp.maximum(y[:c, :], 0.0)         # ReLU(proj conv)        -> VPU
    gate = jax.nn.sigmoid(y[c:, :])           # sigmoid(transform conv) -> EUP

    xf = x.astype(jnp.float32)
    out = xf + gate * (proj - xf)             # == gate*proj + (1-gate)*x
    o_ref[...] = out.astype(o_ref.dtype)


def _default_tile_l(C: int, L: int) -> int:
    # Keep double-buffered f32 in+out tiles around <= 8 MiB:
    #   2 (dbl-buf) * 2 (in+out) * C * tile_l * 4B <= 8 MiB  =>  tile_l <= 512*1024 / C
    tl = (512 * 1024) // max(C, 1)
    tl = max(128, min(2048, (tl // 128) * 128))
    tl = min(tl, _round_up(L, 128))           # don't over-pad short sequences
    return tl


def highway_forward(x_ncl, w_proj, b_proj, w_trans, b_trans,
                    *, tile_l=None, matmul_dtype=None):
    """x_ncl: (B, C, L) like PyTorch Conv1d input.
    w_*: (C, C, 1) Conv1d weights; b_*: (C,) biases.
    matmul_dtype: e.g. jnp.bfloat16 to feed the MXU bf16 operands (v6e/v7x)."""
    B, C, L = x_ncl.shape
    assert w_proj.shape == (C, C, 1) and w_trans.shape == (C, C, 1)
    assert b_proj.shape == (C,) and b_trans.shape == (C,)

    # Fuse the two 1x1-conv weights into one (2C, C) operand. In NCL layout the
    # conv is out_tile = W @ x_tile, so no transpose of the Conv1d weight is needed.
    w_cat = jnp.concatenate([w_proj[:, :, 0], w_trans[:, :, 0]], axis=0)
    if matmul_dtype is not None:
        w_cat = w_cat.astype(matmul_dtype)
    b_cat = jnp.concatenate([b_proj, b_trans], axis=0).reshape(2 * C, 1)
    b_cat = b_cat.astype(jnp.float32)

    if tile_l is None:
        tile_l = _default_tile_l(C, L)
    assert tile_l > 0 and tile_l % 128 == 0, "tile_l must be a multiple of 128"

    # Ragged L: pad up to a multiple of the tile, slice the result back.
    L_pad = _round_up(L, tile_l)
    x_in = x_ncl if L_pad == L else jnp.pad(x_ncl, ((0, 0), (0, 0), (0, L_pad - L)))
    grid = (B, L_pad // tile_l)

    out_pad = pl.pallas_call(
        highway_kernel,
        out_shape=jax.ShapeDtypeStruct((B, C, L_pad), x_ncl.dtype),
        grid_spec=pltpu.PrefetchScalarGridSpec(
            num_scalar_prefetch=0,
            grid=grid,
            in_specs=[
                # x tile: batch dim squeezed -> kernel sees a clean (C, tile_l) ref.
                pl.BlockSpec((pl.Squeezed(), C, tile_l), lambda b, j: (b, 0, j)),
                pl.BlockSpec((2 * C, C), lambda b, j: (0, 0)),  # fused weights (resident)
                pl.BlockSpec((2 * C, 1), lambda b, j: (0, 0)),  # fused biases
            ],
            out_specs=pl.BlockSpec((pl.Squeezed(), C, tile_l), lambda b, j: (b, 0, j)),
        ),
        compiler_params=pltpu.CompilerParams(
            # Both axes are independent -> megacore sharding on v7x.
            dimension_semantics=("parallel", "parallel"),
            # Tiles are budgeted to <= ~8 MiB; 32 MiB leaves ample headroom on
            # v5e/v6e/v7x without exceeding v7x's 64 MiB physical VMEM.
            vmem_limit_bytes=32 * 1024 * 1024,
        ),
    )(x_in, w_cat, b_cat)

    return out_pad if L_pad == L else out_pad[:, :, :L]


def highway_reference(x_ncl, w_proj, b_proj, w_trans, b_trans):
    """Pure-JAX f32 reference mirroring the PyTorch forward exactly."""
    proj = jnp.einsum("oc,bcl->bol", w_proj[:, :, 0], x_ncl) + b_proj[None, :, None]
    gate_logit = jnp.einsum("oc,bcl->bol", w_trans[:, :, 0], x_ncl) + b_trans[None, :, None]
    proj = jnp.maximum(proj, 0.0)
    gate = jax.nn.sigmoid(gate_logit)
    return gate * proj + (1.0 - gate) * x_ncl


if __name__ == "__main__":
    # Small shapes consistent with the module: input_size=C channels over a sequence.
    B, C, L = 2, 32, 16
    key = jax.random.PRNGKey(0)
    kx, kwp, kbp, kwt = jax.random.split(key, 4)

    x = jax.random.normal(kx, (B, C, L), dtype=jnp.float32)

    # Deterministic parameter init (mimics Conv1d parameter shapes / fan-in bound).
    bound = 1.0 / (C ** 0.5)
    w_proj = jax.random.uniform(kwp, (C, C, 1), minval=-bound, maxval=bound,
                                dtype=jnp.float32)
    b_proj = jax.random.uniform(kbp, (C,), minval=-bound, maxval=bound,
                                dtype=jnp.float32)
    w_trans = jax.random.uniform(kwt, (C, C, 1), minval=-bound, maxval=bound,
                                 dtype=jnp.float32)
    b_trans = jnp.full((C,), -2.0, dtype=jnp.float32)  # transform.bias.data.fill_(-2.0)

    ref = highway_reference(x, w_proj, b_proj, w_trans, b_trans)

    # 1) Exact-precision path (matches PyTorch f32 semantics).
    out = highway_forward(x, w_proj, b_proj, w_trans, b_trans)
    out = jax.block_until_ready(out)
    assert out.shape == (B, C, L)
    assert jnp.allclose(out, ref, atol=1e-5, rtol=1e-5)

    # 2) bf16-MXU-operand path (recommended for v6e/v7x throughput); elementwise
    #    blend stays f32. Tolerance loosened only for bf16 operand rounding.
    out_bf16 = highway_forward(x, w_proj, b_proj, w_trans, b_trans,
                               matmul_dtype=jnp.bfloat16)
    out_bf16 = jax.block_until_ready(out_bf16)
    assert jnp.allclose(out_bf16, ref, atol=5e-2, rtol=5e-2)

    # TODO(synk): nn.Dropout is declared but never applied in Highway.forward,
    # so no dropout is implemented here (matches the PyTorch forward exactly).
    print("KERNEL_OK")
</pallas_src>

<mosaic_0001>
module attributes {stable_mosaic.version = 11 : i64} {
  func.func @highway_kernel(%arg0: i32, %arg1: i32, %arg2: memref<1x32x128xf32, #tpu.memory_space<vmem>>, %arg3: memref<64x32xf32, #tpu.memory_space<vmem>>, %arg4: memref<64x1xf32, #tpu.memory_space<vmem>>, %arg5: memref<1x32x128xf32, #tpu.memory_space<vmem>>) attributes {dimension_semantics = [#tpu.dimension_semantics<parallel>, #tpu.dimension_semantics<parallel>], iteration_bounds = array<i64: 2, 1>, scalar_prefetch = 0 : i64, scratch_operands = 0 : i64, tpu.core_type = #tpu.core_type<tc>, window_params = [{transform_indices = @transform_0, window_bounds = array<i64: 1, 32, 128>}, {pipeline_mode = #tpu.pipeline_mode<synchronous>, transform_indices = @transform_1, window_bounds = array<i64: 64, 32>}, {pipeline_mode = #tpu.pipeline_mode<synchronous>, transform_indices = @transform_2, window_bounds = array<i64: 64, 1>}, {transform_indices = @transform_3, window_bounds = array<i64: 1, 32, 128>}]} {
    %c0 = arith.constant 0 : index
    %c0_0 = arith.constant 0 : index
    %c0_1 = arith.constant 0 : index
    %0 = vector.load %arg2[%c0, %c0_0, %c0_1] : memref<1x32x128xf32, #tpu.memory_space<vmem>>, vector<1x32x128xf32>
    %1 = vector.shape_cast %0 : vector<1x32x128xf32> to vector<32x128xf32>
    %c0_2 = arith.constant 0 : index
    %c0_3 = arith.constant 0 : index
    %2 = vector.load %arg3[%c0_2, %c0_3] : memref<64x32xf32, #tpu.memory_space<vmem>>, vector<64x32xf32>
    %cst = arith.constant dense<0.000000e+00> : vector<64x128xf32>
    %3 = tpu.matmul %2, %1, %cst {dimension_numbers = #tpu.dot_dimension_numbers<[1], [0], [0], [1], [0, 0, 1, 1], [], []>} : vector<64x32xf32>, vector<32x128xf32>, vector<64x128xf32> -> vector<64x128xf32>
    %c0_4 = arith.constant 0 : index
    %c0_5 = arith.constant 0 : index
    %4 = vector.load %arg4[%c0_4, %c0_5] : memref<64x1xf32, #tpu.memory_space<vmem>>, vector<64x1xf32>
    %5 = vector.broadcast %4 : vector<64x1xf32> to vector<64x128xf32>
    %6 = arith.addf %3, %5 : vector<64x128xf32>
    %7 = vector.extract_strided_slice %6 {offsets = [0, 0], sizes = [32, 128], strides = [1, 1]} : vector<64x128xf32> to vector<32x128xf32>
    %cst_6 = arith.constant 0.000000e+00 : f32
    %8 = vector.broadcast %cst_6 : f32 to vector<32x128xf32>
    %9 = arith.maximumf %7, %8 : vector<32x128xf32>
    %10 = vector.extract_strided_slice %6 {offsets = [32, 0], sizes = [32, 128], strides = [1, 1]} : vector<64x128xf32> to vector<32x128xf32>
    %11 = arith.negf %10 : vector<32x128xf32>
    %12 = math.exp %11 : vector<32x128xf32>
    %cst_7 = arith.constant 1.000000e+00 : f32
    %13 = vector.broadcast %cst_7 : f32 to vector<32x128xf32>
    %14 = arith.addf %13, %12 : vector<32x128xf32>
    %15 = arith.divf %13, %14 : vector<32x128xf32>
    %16 = arith.subf %9, %1 : vector<32x128xf32>
    %17 = arith.mulf %15, %16 : vector<32x128xf32>
    %18 = arith.addf %1, %17 : vector<32x128xf32>
    %c0_8 = arith.constant 0 : index
    %c0_9 = arith.constant 0 : index
    %c0_10 = arith.constant 0 : index
    %19 = vector.load %arg5[%c0_8, %c0_9, %c0_10] : memref<1x32x128xf32, #tpu.memory_space<vmem>>, vector<1x32x128xf32>
    %20 = vector.shape_cast %19 : vector<1x32x128xf32> to vector<32x128xf32>
    %21 = vector.shape_cast %18 : vector<32x128xf32> to vector<1x32x128xf32>
    tpu.vector_store %arg5[%c0_8, %c0_9, %c0_10], %21 {strides = array<i32>} : memref<1x32x128xf32, #tpu.memory_space<vmem>>, vector<1x32x128xf32>,
    return
  }
  func.func @transform_0(%arg0: i32, %arg1: i32) -> (i32, i32, i32) {
    %c0_i32 = arith.constant 0 : i32
    %c0_i32_0 = arith.constant 0 : i32
    return %arg0, %c0_i32, %arg1 : i32, i32, i32
  }
  func.func @transform_1(%arg0: i32, %arg1: i32) -> (i32, i32) {
    %c0_i32 = arith.constant 0 : i32
    %c0_i32_0 = arith.constant 0 : i32
    %c0_i32_1 = arith.constant 0 : i32
    return %c0_i32, %c0_i32_0 : i32, i32
  }
  func.func @transform_2(%arg0: i32, %arg1: i32) -> (i32, i32) {
    %c0_i32 = arith.constant 0 : i32
    %c0_i32_0 = arith.constant 0 : i32
    %c0_i32_1 = arith.constant 0 : i32
    return %c0_i32, %c0_i32_0 : i32, i32
  }
  func.func @transform_3(%arg0: i32, %arg1: i32) -> (i32, i32, i32) {
    %c0_i32 = arith.constant 0 : i32
    %c0_i32_0 = arith.constant 0 : i32
    return %arg0, %c0_i32, %arg1 : i32, i32, i32
  }
}

</mosaic_0001>

<bundles_post_ra>
// kernel: tpu_custom_call.1
= control target key start
LH: loop header
LB: loop body
LE: loop exit
PB: predicated region body
PF: predicated region fallthrough
CT: control target
= control target key end

     0   :  { %8 = vsyncpa [#allocation3], 0  ;;  %s942_s0 = inlined_call_operand.vmem [shape: f32[2,32,128], index: 0, kind: input, shape index: {}]   ;;  %s943_s1 = inlined_call_operand.vmem [shape: f32[64,32], index: 1, kind: input, shape index: {}]   ;;  %s944_s2 = inlined_call_operand.vmem [shape: f32[64,1], index: 2, kind: input, shape index: {}]   ;;  %s945_s3 = inlined_call_operand.hbm [shape: f32[2,32,128], index: 3, kind: output, shape index: {}]  }
   0x1   :  { %10 = vsyncpa [#allocation3 + $0x1], 0  ;;  %s730_s12 = smov 0   ;;  %s732_s13 = smov 0  }
   0x2   :  { %s734_s14 = smov 0   ;;  %s736_s15 = smov 0  }
   0x3   :  { %s738_s16 = smov 0   ;;  %s740_s17 = smov 0  }
   0x4 LB: > { %s511_s18 = sadd.s32 4294967295, %s705_s17   ;;  %s512_s19 = sadd.s32 4294967294, %s705_s17   ;;  %s705_s17 = sphi %s740_s17, %s16_s17   ;;  %s701_s16 = sphi %s738_s16, %s954_s16   ;;  %s697_s15 = sphi %s736_s15, %s953_s15   ;;  %s693_s14 = sphi %s734_s14, %s952_s14   ;;  %s689_s13 = sphi %s732_s13, %s951_s13   ;;  %s685_s12 = sphi %s730_s12, %s950_s12  }
   0x5   : > { %s28_s20 = sadd.s32 1, %s701_s16  ;;  %s107_s21 = sadd.s32 1, %s693_s14 }
   0x6   : > { %p30_p0 = scmp.ge.s32.totalorder %s28_s20, 2  ;;  %p117_p1 = scmp.ne.s32.totalorder %s693_s14, %s689_s13 }
   0x7   : > { %p118_p2 = scmp.eq.s32.totalorder %s511_s18, 1  ;;  %p123_p3 = scmp.ne.s32.totalorder %s689_s13, %s685_s12 }
   0x8   : > { %s956_s20 = smov (%p30_p0, %s28_s20), 0  ;;  %p124_p5 = scmp.eq.s32.totalorder %s512_s19, 1 }
   0x9   : > { %p770_p4 = por %p118_p2, %p117_p1  ;;  %s102_s23 = ssub.s32 %s701_s16, %s956_s20 }
   0xa   : > { %p515_p6 = scmp.ge.s32.totalorder %s705_s17, 1  ;;  %p105_p7 = scmp.eq.s32.totalorder %s102_s23, 0 }
   0xb   : > { %p777_p8 = por %p124_p5, %p123_p3  ;;  %p159_p9 = scmp.lt.s32.totalorder %s705_s17, 3 }
   0xc   : > { %s783_s25 = scalar_select %p105_p7, %s693_s14, %s107_s21  }
   0xd   : > { %p160_p10 = pnand %p515_p6, %p159_p9 }
   0xe   : > { %p186_p11 = scmp.lt.s32.totalorder (!%p160_p10), %s697_s15, 1  ;;  %s183_s29 = sand.u32 (!%p160_p10), 1, %s689_s13  }
   0xf   : > { %163 = sbr.rel (%p160_p10) target bundleno = 214 (0xd6), region = 32  ;;  %s417_s10 = scalar_lea.sflag (!%p160_p10), [#allocation3], %s183_s29 }
  0x10   : > { %s647_s23 = scalar_lea.hbm (!%p160_p10), %s945_s3, 64 }
  0x14   : > { %v707_v0 = vmov 0   ;;  %v212_v1 = vld [vmem:[%s944_s2 + $0x30] sm:$0xff]  ;;  %v210_v2 = vld [vmem:[%s944_s2 + $0x20] sm:$0xff]  ;;  %s187_s30 = scalar_select %p186_p11, %s697_s15, 1  ;;  %v213_v6 = vld [vmem:[%s944_s2 + $0x38] sm:$0xff]  ;;  %vm254_vm0 = vcmask 261120  }
  0x15   : > { %609 = vset.pattern.permute.xlu1 %v707_v0  ;;  %608 = vset.pattern.permute.xlu0 %v707_v0  ;;  %v206_v3 = vld [vmem:[%s944_s2] sm:$0xff]  ;;  %v211_v8 = vld [vmem:[%s944_s2 + $0x28] sm:$0xff]  ;;  %v200_v10 = vld [vmem:[%s943_s1 + $0x10] sm:$0xff] }
  0x16   : > { %246 = vperm.xlu1 %609, %v212_v1   ;;  %236 = vperm.xlu0 %608, %v210_v2   ;;  %s536_s4 = sshll.u32 %s187_s30, 5  ;;  %v202_v11 = vld [vmem:[%s943_s1 + $0x20] sm:$0xff]  ;;  %v204_v12 = vld [vmem:[%s943_s1 + $0x30] sm:$0xff]  ;;  %v207_v13 = vld [vmem:[%s944_s2 + $0x8] sm:$0xff]  ;;  %s516_s30 = sshll.u32 %s183_s29, 5 }
  0x17   : > { %610 = vset.pattern.permute.xlu2 %v707_v0  ;;  %s193_s9 = scalar_lea.vmem %s942_s0, %s536_s4  ;;  %v209_v14 = vld [vmem:[%s944_s2 + $0x18] sm:$0xff]  ;;  %v208_v15 = vld [vmem:[%s944_s2 + $0x10] sm:$0xff]  ;;  %v198_v16 = vld [vmem:[%s943_s1] sm:$0xff]  ;;  %s537_s4 = sshll.u32 %s697_s15, 5 }
  0x18   : > { %216 = vperm.xlu2 %610, %v206_v3   ;;  %v799_v4 = vld [vmem:[%s193_s9 + $0x18] sm:$0xff]  ;;  %v801_v5 = vld [vmem:[%s193_s9 + $0x10] sm:$0xff]  ;;  %v809_v7 = vld [vmem:[%s193_s9 + $0x8] sm:$0xff]  ;;  %s185_s5 = scalar_lea.vmem [#allocation2], %s516_s30  ;;  %s429_s7 = scalar_lea.hbm %s945_s3, %s537_s4 }
  0x19   : > { %538 = vmatpush.msra.mxu1 %v799_v4  ;;  %539 = vmatpush.msra.mxu2 %v799_v4  ;;  %v818_v9 = vld [vmem:[%s193_s9] sm:$0xff]  ;;  %v201_v17 = vld [vmem:[%s943_s1 + $0x18] sm:$0xff]  ;;  %v203_v18 = vld [vmem:[%s943_s1 + $0x28] sm:$0xff]  ;;  %s430_s8 = sshll.u32 %s185_s5, 4  ;;  %s432_s9 = sshll.u32 %s429_s7, 4  ;;  %s431_s8 = int_to_ptr.vmem [resolvable:$true] %s430_s8  ;;  %s433_s9 = int_to_ptr.hbm [resolvable:$true] %s432_s9 }
  0x1a   : > { %540 = vmatpush.msra.mxu3 %v799_v4  ;;  %291 = vmatpush.msra.mxu0 %v799_v4  ;;  %v205_v19 = vld [vmem:[%s943_s1 + $0x38] sm:$0xff]  ;;  %v199_v20 = vld [vmem:[%s943_s1 + $0x8] sm:$0xff]  ;;  %s641_s11 = sshra.s32 %s433_s9, 4  ;;  %s642_s11 = int_to_ptr.hbm [resolvable:$true] %s641_s11 }
  0x1b   : > { %541 = vmatpush.msra.mxu1 %v801_v5  ;;  %542 = vmatpush.msra.mxu2 %v801_v5  ;;  %s643_s18 = scalar_lea.hbm %s642_s11, 32  ;;  %p648_p1 = scmp.lt.s32.totalorder %s642_s11, %s945_s3 }
  0x1c   : > { %543 = vmatpush.msra.mxu3 %v801_v5  ;;  %292 = vmatpush.msra.mxu0 %v801_v5  ;;  %p644_p12 = scmp.ne.s32.totalorder %s642_s11, %s643_s18  ;;  %p649_p2 = scmp.lt.s32.totalorder %s647_s23, %s643_s18 }
  0x1d   : > { %544 = vmatpush.msra.mxu1 %v809_v7  ;;  %545 = vmatpush.msra.mxu2 %v809_v7 }
  0x1e   : > { %251 = vperm.xlu1 %609, %v213_v6   ;;  %546 = vmatpush.msra.mxu3 %v809_v7  ;;  %p645_p13 = pnand %p644_p12, %p770_p4  ;;  %p650_p3 = por %p649_p2, %p648_p1 }
  0x1f   : > { %241 = vperm.xlu0 %608, %v211_v8   ;;  %547 = vmatpush.msra.mxu1 %v818_v9 }
  0x20   : > { %548 = vmatpush.msra.mxu2 %v818_v9  ;;  %549 = vmatpush.msra.mxu3 %v818_v9  ;;  %p646_p0 = pneg %p645_p13 }
  0x21   : > { %521 = vmatmul.msk.f32.vlgmr.msra.gmra.mxu1 %vm254_vm0, %v200_v10  ;;  %523 = vmatmul.msk.f32.vlgmr.msra.gmra.mxu2 %vm254_vm0, %v202_v11 }
  0x22   : > { %525 = vmatmul.msk.f32.vlgmr.msra.gmra.mxu3 %vm254_vm0, %v204_v12  ;;  %221 = vperm.xlu2 %610, %v207_v13   ;;  %p651_p5 = pnand %p650_p3, %p646_p0 }
  0x23   : > { %293 = vmatpush.msra.mxu0 %v809_v7 }
  0x25   : > { %294 = vmatpush.msra.mxu0 %v818_v9 }
  0x26   : > { %231 = vperm.xlu1 %609, %v209_v14   ;;  %519 = vmatmul.msk.f32.vlgmr.msra.gmra.mxu0 %vm254_vm0, %v198_v16 }
  0x27   : > { %226 = vperm.xlu0 %608, %v208_v15  }
  0x29   : > { %522 = vmatmul.msk.f32.gmra.mxu1 %vm254_vm0, %v201_v17  ;;  %524 = vmatmul.msk.f32.gmra.mxu2 %vm254_vm0, %v203_v18 }
  0x2a   : > { %526 = vmatmul.msk.f32.gmra.mxu3 %vm254_vm0, %v205_v19 }
  0x2e   : > { %520 = vmatmul.msk.f32.gmra.mxu0 %vm254_vm0, %v199_v20 }
  0x72   : > { %v217_v41 = vpop.permute.xlu2 %216 }
  0x7c   : > { %v222_v1 = vpop.permute.xlu2 %221 }
  0x88   : > { %v237_v21 = vpop.permute.xlu0 %236  ;;  %v247_v22 = vpop.permute.xlu1 %246 }
  0x90   : > { %v252_v30 = vpop.permute.xlu1 %251 }
  0x91   : > { %v242_v29 = vpop.permute.xlu0 %241 }
  0x98   : > { %v232_v18 = vpop.permute.xlu1 %231 }
  0x99   : > { %v227_v42 = vpop.permute.xlu0 %226 }
  0x9e   : > { %v302_v44 = vpop.f32.mrf.mxu1 }
  0x9f   : > { %v303_v46 = vadd.f32 %v302_v44, %v227_v42 }
  0xa1   : > { %v322_v54 = vmax.f32 %v303_v46, 0.0 }
  0xa3   : > { %v296_v43 = vpop.f32.mrf.mxu0  ;;  %v402_v3 = vsub.f32 %v322_v54, %v801_v5 }
  0xa4   : > { %v308_v23 = vpop.f32.mrf.mxu2  ;;  %v297_v49 = vadd.f32 %v296_v43, %v217_v41 }
  0xa5   : > { %v314_v24 = vpop.f32.mrf.mxu3  ;;  %v309_v25 = vadd.f32 %v308_v23, %v237_v21 }
  0xa6   : > { %v315_v26 = vadd.f32 %v314_v24, %v247_v22  ;;  %v320_v58 = vmax.f32 %v297_v49, 0.0  ;;  %v305_v10 = vpop.f32.mrf.mxu1 }
  0xa7   : > { %v527_v27 = vmul.f32 -1.442695, %v309_v25  ;;  %v306_v23 = vadd.f32 %v305_v10, %v232_v18 }
  0xa8   : > { %v529_v28 = vmul.f32 -1.442695, %v315_v26  ;;  %v400_v13 = vsub.f32 %v320_v58, %v818_v9 }
  0xa9   : > { %611 = vpow2.f32 %v527_v27 }
  0xaa   : > { %613 = vpow2.f32 %v529_v28 }
  0xab   : > { %v299_v2 = vpop.f32.mrf.mxu0 }
  0xac   : > { %v311_v31 = vpop.f32.mrf.mxu2  ;;  %v300_v17 = vadd.f32 %v299_v2, %v222_v1 }
  0xad   : > { %v317_v32 = vpop.f32.mrf.mxu3  ;;  %v312_v33 = vadd.f32 %v311_v31, %v242_v29 }
  0xae   : > { %v318_v34 = vadd.f32 %v317_v32, %v252_v30  ;;  %v321_v30 = vmax.f32 %v300_v17, 0.0 }
  0xaf   : > { %v612_v35 = vpop.eup %611  ;;  %v528_v36 = vmul.f32 -1.442695, %v312_v33 }
  0xb0   : > { %v614_v37 = vpop.eup %613  ;;  %v336_v38 = vadd.f32 1.0, %v612_v35  ;;  %v530_v39 = vmul.f32 -1.442695, %v318_v34 }
  0xb1   : > { %v338_v40 = vadd.f32 1.0, %v614_v37  ;;  %615 = vpow2.f32 %v528_v36  ;;  %v323_v36 = vmax.f32 %v306_v23, 0.0 }
  0xb2   : > { %617 = vrcp.f32 %v336_v38  ;;  %v349_v59 = vand.u32 2147483647, %v336_v38  ;;  %v351_v61 = vand.u32 2147483648, %v336_v38  ;;  %vm345_vm3 = vweird.f32 %v336_v38 }
  0xb3   : > { %619 = vrcp.f32 %v338_v40  ;;  %v381_v60 = vand.u32 2147483648, %v338_v40  ;;  %v379_v63 = vand.u32 2147483647, %v338_v40  ;;  %vm375_vm4 = vweird.f32 %v338_v40 }
  0xb4   : > { %621 = vpow2.f32 %v530_v39  ;;  %v352_v16 = vor.u32 1.1754944e-38, %v351_v61  ;;  %vm350_vm8 = vcmp.eq.f32.partialorder %v349_v59, 8.507059e+37  ;;  %v403_v46 = vsub.f32 %v323_v36, %v799_v4 }
  0xb5   : > { %v382_v14 = vor.u32 1.1754944e-38, %v381_v60  ;;  %vm380_vm7 = vcmp.eq.f32.partialorder %v379_v63, 8.507059e+37 }
  0xb7   : > { %v616_v45 = vpop.eup %615 }
  0xb8   : > { %v618_v47 = vpop.eup %617  ;;  %v870_v48 = vadd.f32 1.0, %v616_v45 }
  0xb9   : > { %v620_v50 = vpop.eup %619  ;;  %v341_v51 = vmul.f32 %v618_v47, %v336_v38  ;;  %vm346_vm1 = vweird.f32 %v618_v47 }
  0xba   : > { %v622_v52 = vpop.eup %621  ;;  %v371_v53 = vmul.f32 %v620_v50, %v338_v40  ;;  %623 = vrcp.f32 %v870_v48  ;;  %vm376_vm2 = vweird.f32 %v620_v50  ;;  %vm879_vm5 = vmor %vm345_vm3, %vm346_vm1  ;;  %v366_v29 = vand.u32 2147483648, %v870_v48 }
  0xbb   : > { %v342_v55 = vsub.f32 1.0, %v341_v51  ;;  %v873_v56 = vadd.f32 1.0, %v622_v52  ;;  %vm377_vm6 = vmor %vm375_vm4, %vm376_vm2  ;;  %v364_v32 = vand.u32 2147483647, %v870_v48  ;;  %vm360_vm10 = vweird.f32 %v870_v48 }
  0xbc   : > { %v372_v57 = vsub.f32 1.0, %v371_v53  ;;  %v367_v41 = vor.u32 1.1754944e-38, %v366_v29 }
  0xbd   : > { %625 = vrcp.f32 %v873_v56  ;;  %v343_v0 = vmul.f32 %v618_v47, %v342_v55  ;;  %v396_v37 = vand.u32 2147483648, %v873_v56  ;;  %v394_v40 = vand.u32 2147483647, %v873_v56 }
  0xbe   : > { %v373_v62 = vmul.f32 %v620_v50, %v372_v57  ;;  %vm365_vm13 = vcmp.eq.f32.partialorder %v364_v32, 8.507059e+37  ;;  %vm390_vm14 = vweird.f32 %v873_v56 }
  0xbf   : > { %v344_v11 = vadd.f32 %v618_v47, %v343_v0  ;;  %v397_v44 = vor.u32 1.1754944e-38, %v396_v37  ;;  %vm395_vm0 = vcmp.eq.f32.partialorder %v394_v40, 8.507059e+37 }
  0xc0   : > { %v624_v6 = vpop.eup %623  ;;  %v374_v8 = vadd.f32 %v620_v50, %v373_v62 }
  0xc1   : > { %v356_v15 = vmul.f32 %v624_v6, %v870_v48  ;;  %v348_v20 = vsel %vm879_vm5, %v618_v47, %v344_v11  ;;  %vm361_vm9 = vweird.f32 %v624_v6 }
  0xc2   : > { %v378_v19 = vsel %vm377_vm6, %v620_v50, %v374_v8  ;;  %v353_v25 = vsel %vm350_vm8, %v352_v16, %v348_v20  ;;  %vm362_vm12 = vmor %vm360_vm10, %vm361_vm9 }
  0xc3   : > { %v626_v21 = vpop.eup %625  ;;  %v383_v22 = vsel %vm380_vm7, %v382_v14, %v378_v19  ;;  %v357_v24 = vsub.f32 1.0, %v356_v15  ;;  %v404_v28 = vmul.f32 %v400_v13, %v353_v25 }
  0xc4   : > { %v406_v26 = vmul.f32 %v402_v3, %v383_v22  ;;  %v386_v27 = vmul.f32 %v626_v21, %v873_v56  ;;  %vm391_vm11 = vweird.f32 %v626_v21 }
  0xc5   : > { %v358_v31 = vmul.f32 %v624_v6, %v357_v24  ;;  %v408_v35 = vadd.f32 %v404_v28, %v818_v9  ;;  %v401_v9 = vsub.f32 %v321_v30, %v809_v7  ;;  %vm392_vm15 = vmor %vm390_vm14, %vm391_vm11 }
  0xc6   : > { %v410_v33 = vadd.f32 %v406_v26, %v801_v5  ;;  %v387_v34 = vsub.f32 1.0, %v386_v27 }
  0xc7   : > { %v359_v38 = vadd.f32 %v624_v6, %v358_v31  ;;  %412 = vst [vmem:[%s185_s5] sm:$0xff] %v408_v35 }
  0xc8   : > { %v388_v39 = vmul.f32 %v626_v21, %v387_v34  ;;  %414 = vst [vmem:[%s185_s5 + $0x10] sm:$0xff] %v410_v33 }
  0xc9   : > { %v363_v5 = vsel %vm362_vm12, %v624_v6, %v359_v38 }
  0xca   : > { %v389_v42 = vadd.f32 %v626_v21, %v388_v39  ;;  %v368_v43 = vsel %vm365_vm13, %v367_v41, %v363_v5 }
  0xcb   : > { %v405_v45 = vmul.f32 %v401_v9, %v368_v43 }
  0xcc   : > { %v393_v47 = vsel %vm392_vm15, %v626_v21, %v389_v42 }
  0xcd   : > { %v398_v48 = vsel %vm395_vm0, %v397_v44, %v393_v47  ;;  %v409_v49 = vadd.f32 %v405_v45, %v809_v7 }
  0xce   : > { %v407_v50 = vmul.f32 %v403_v46, %v398_v48 }
  0xcf   : > { %413 = vst [vmem:[%s185_s5 + $0x8] sm:$0xff] %v409_v49 }
  0xd0   : > { %v411_v51 = vadd.f32 %v407_v50, %v799_v4 }
  0xd2   : > { %415 = vst [vmem:[%s185_s5 + $0x18] sm:$0xff] %v411_v51 }
  0xd3   : > { %654 = shalt.err (!%p651_p5)
}
  0xd4   : > { %s708_s28 = smov 128   ;;  %s709_s29 = smov 8  }
  0xd5   : > { %550 = dma.vmem_to_hbm [thread:$0]  (%p770_p4), %s431_s8, 512, %s433_s9, %s417_s10, %s708_s28, %s708_s28, %s709_s29  }
  0xd6 PF: > { %p556_p6 = scmp.ge.s32.totalorder %s705_s17, 2  ;;  %s447_s30 = sand.u32 1, %s685_s12  }
  0xd7   : > { %s448_s4 = scalar_lea.sflag [#allocation3], %s447_s30 }
  0xd8   : > { %p553_p7 = pnand %p556_p6, %p777_p8 }
  0xda   : > { %p554_p9 = pneg %p553_p7 }
  0xdc   : > { %680 = dma.done.wait (%p554_p9), %s448_s4, 512  }
  0xdd   : > { %682 = vsyncadd (%p554_p9), %s448_s4, 4294966784  ;;  %s16_s17 = sadd.s32 1, %s705_s17   ;;  %s950_s12 = smov %s689_s13 }
  0xde   : > { %p13_p10 = scmp.ge.s32.totalorder %s16_s17, 4   ;;  %s951_s13 = smov %s693_s14 }
  0xdf   : > { %s952_s14 = smov %s783_s25  ;;  %s953_s15 = smov %s701_s16 }
  0xe0   : > { %s954_s16 = smov %s956_s20  ;;  %15 = sbr.rel (!%p13_p10) target bundleno = 4 (0x4), region = 67 }
  0xe5   :  { %454 = vsyncpa [#allocation3], 1 }
  0xe6   :  { %456 = vsyncpa [#allocation3 + $0x1], 1 }

</bundles_post_ra>
